<compile_context>
chip_gen: v7x
topology: tpu7x:2x2x1
jax: 0.10.0
libtpu: 0.0.40
codegen_flags: <defaults>
</compile_context>

<pallas_src>
import functools

import jax
import jax.numpy as jnp
import numpy as np
from jax.experimental import pallas as pl
from jax.experimental.pallas import tpu as pltpu


def _sobel_kernel(x_ref, out_ref, *, width: int, hw: int):
    # x_ref   : (TB, H*W)   -- TB flattened (b, c) slabs
    # out_ref : (TB, 2*H*W) -- [:, :H*W] = dx (kernel_x), [:, H*W:] = dy (kernel_y)
    x = x_ref[...]
    if x.dtype != jnp.float32 and x.dtype != jnp.bfloat16:
        x = x.astype(jnp.float32)        # bf16 stays bf16 (packed rolls / VALU)

    # Edge-validity masks over the flattened (h, w) lane index, built in-kernel
    # (cheap VPU work hidden under the memory-bound loop; frees the VMEM the
    # old resident (4, H*W) f32 mask block used to occupy).
    lane = jax.lax.broadcasted_iota(jnp.int32, (1, hw), 1)
    if (width & (width - 1)) == 0:
        col = lane & (width - 1)         # power-of-two W: cheap bitwise AND
    else:
        col = lane % width               # TODO(synk): fall back to host masks if
                                         # vector remsi ever fails to lower.
    m_u = lane >= width                  # upper neighbour exists (h > 0)
    m_d = lane < hw - width              # lower neighbour exists (h < H-1)
    # m_l / m_r are each used twice below; hoist their sublane broadcast once
    # (JAX does not CSE broadcast_in_dim).
    m_l = jnp.broadcast_to(col > 0, x.shape)           # left  neighbour exists
    m_r = jnp.broadcast_to(col < width - 1, x.shape)   # right neighbour exists

    def shift(v, k):
        # out[L] = v[L - k]; wrap-around values are zeroed by the masks above.
        return pltpu.roll(v, k % hw, 1)

    # Separable Sobel: 2 vertical rolls + 4 horizontal rolls = 6 rolls total
    # (down from 8 in the non-separable form).
    xu = jnp.where(m_u, shift(x, width), 0)     # x[h-1, w], zero padded
    xd = jnp.where(m_d, shift(x, -width), 0)    # x[h+1, w], zero padded
    s = xu + 2 * x + xd                         # vertical smooth   [1, 2, 1]^T
    e = xd - xu                                 # vertical gradient [-1, 0, 1]^T

    # gx[h,w] = s[h,w+1] - s[h,w-1]             (cross-corr with kernel_x)
    gx = jnp.where(m_r, shift(s, -1), 0) - jnp.where(m_l, shift(s, 1), 0)
    out_ref[:, 0:hw] = gx.astype(out_ref.dtype)

    # gy[h,w] = e[h,w-1] + 2*e[h,w] + e[h,w+1]  (cross-corr with kernel_y)
    gy = jnp.where(m_l, shift(e, 1), 0) + 2 * e + jnp.where(m_r, shift(e, -1), 0)
    out_ref[:, hw:2 * hw] = gy.astype(out_ref.dtype)


def _vmem_budget_bytes():
    """(pipeline block budget, compiler vmem limit), sized to the TPU generation."""
    try:
        vmem = int(pltpu.get_tpu_info().vmem_capacity_bytes)
    except Exception:                               # conservative fallback
        vmem = 64 * 1024 * 1024
    if vmem >= 96 * 1024 * 1024:                    # v5e / v6e class: 128 MiB VMEM
        return 80 * 1024 * 1024, 104 * 1024 * 1024
    return 36 * 1024 * 1024, 48 * 1024 * 1024       # v7x class: 64 MiB VMEM


def _choose_block_rows(n_slabs: int, hw: int, itemsize: int, budget: int) -> int:
    """How many flattened (b, c) slabs to process per grid step.

    Block rows must be a multiple of 8 (sublane rule) or the full row extent.
    """
    per_slab = 2 * 3 * hw * itemsize       # 2x double-buffer * (1 in + 2 out) rows
    cap = max(1, budget // per_slab)       # rows that fit the pipeline budget
    if n_slabs < 16:
        return n_slabs                     # single full-extent block
    if cap < 8:
        # Even an 8-row block overflows the budget (very large H*W); keep the
        # sublane-legal 8 rows and lean on the raised vmem limit.
        # TODO(synk): add an H-tiled grid axis with a 2-row halo instead of
        # whole-image slabs for this regime.
        return 8
    # Aim for >= 4 grid steps (>= 2 per TensorCore on 2-core chips) and an even
    # step count so megacore work stays balanced, within the VMEM budget.
    tb = max(8, (min(cap, n_slabs // 4) // 8) * 8)
    while tb > 8 and pl.cdiv(n_slabs, tb) % 2 == 1:
        tb -= 8
    return tb


def spatial_gradient(x: jax.Array) -> jax.Array:
    """Pallas implementation of SpatialGradient(winsize=3).forward (NCHW input)."""
    B, C, H, W = x.shape
    n = B * C
    hw = H * W
    itemsize = jnp.dtype(x.dtype).itemsize
    x2 = x.reshape(n, hw)                  # free reshape; no padded HBM copy

    block_budget, vmem_limit = _vmem_budget_bytes()
    tb = _choose_block_rows(n, hw, itemsize, block_budget)
    grid = (pl.cdiv(n, tb),)
    # NOTE: when hw % 128 != 0 the dy store starts mid vreg-tile (masked vst);
    # for typical image sizes hw is a multiple of 128 and both stores are dense.

    out = pl.pallas_call(
        functools.partial(_sobel_kernel, width=W, hw=hw),
        out_shape=jax.ShapeDtypeStruct((n, 2 * hw), x.dtype),
        grid_spec=pltpu.PrefetchScalarGridSpec(
            num_scalar_prefetch=0,
            grid=grid,
            in_specs=[pl.BlockSpec((tb, hw), lambda i: (i, 0))],
            out_specs=pl.BlockSpec((tb, 2 * hw), lambda i: (i, 0)),
        ),
        compiler_params=pltpu.CompilerParams(
            dimension_semantics=("parallel",),
            vmem_limit_bytes=vmem_limit,
        ),
        cost_estimate=pl.CostEstimate(
            flops=20 * n * hw,
            transcendentals=0,
            bytes_accessed=3 * n * hw * itemsize,
        ),
    )(x2)
    return out.reshape(B, C, 2, H, W)


def _reference_spatial_gradient(x_np: np.ndarray) -> np.ndarray:
    """Plain NumPy reference matching the PyTorch module semantics."""
    kx = np.array([[-1.0, 0.0, 1.0], [-2.0, 0.0, 2.0], [-1.0, 0.0, 1.0]],
                  dtype=np.float32)
    ky = kx.T
    B, C, H, W = x_np.shape
    xp = np.pad(x_np, ((0, 0), (0, 0), (1, 1), (1, 1)))
    out = np.zeros((B, C, 2, H, W), dtype=np.float32)
    for i in range(3):
        for j in range(3):
            patch = xp[:, :, i:i + H, j:j + W]
            out[:, :, 0] += kx[i, j] * patch
            out[:, :, 1] += ky[i, j] * patch
    return out


if __name__ == "__main__":
    key = jax.random.PRNGKey(0)

    # Primary shape from the module spec.
    B, C, H, W = 2, 4, 16, 16
    x = jax.random.normal(key, (B, C, H, W), dtype=jnp.float32)
    y = jax.block_until_ready(spatial_gradient(x))
    assert y.shape == (B, C, 2, H, W), y.shape
    np.testing.assert_allclose(np.asarray(y),
                               _reference_spatial_gradient(np.asarray(x)),
                               rtol=1e-5, atol=1e-5)

    # Non-square, lane-aligned W sanity check.
    B2, C2, H2, W2 = 1, 2, 8, 128
    x2 = jax.random.normal(jax.random.PRNGKey(1), (B2, C2, H2, W2),
                           dtype=jnp.float32)
    y2 = jax.block_until_ready(spatial_gradient(x2))
    np.testing.assert_allclose(np.asarray(y2),
                               _reference_spatial_gradient(np.asarray(x2)),
                               rtol=1e-5, atol=1e-5)

    # Larger slab count to exercise the multi-block (grid > 1) path.
    B3, C3, H3, W3 = 2, 8, 16, 16
    x3 = jax.random.normal(jax.random.PRNGKey(2), (B3, C3, H3, W3),
                           dtype=jnp.float32)
    y3 = jax.block_until_ready(spatial_gradient(x3))
    np.testing.assert_allclose(np.asarray(y3),
                               _reference_spatial_gradient(np.asarray(x3)),
                               rtol=1e-5, atol=1e-5)

    print("KERNEL_OK")
</pallas_src>

<mosaic_0001>
module attributes {stable_mosaic.version = 11 : i64} {
  func.func @_sobel_kernel(%arg0: i32, %arg1: memref<8x256xf32, #tpu.memory_space<vmem>>, %arg2: memref<8x512xf32, #tpu.memory_space<vmem>>) attributes {dimension_semantics = [#tpu.dimension_semantics<parallel>], iteration_bounds = array<i64: 1>, scalar_prefetch = 0 : i64, scratch_operands = 0 : i64, tpu.core_type = #tpu.core_type<tc>, window_params = [{transform_indices = @transform_0, window_bounds = array<i64: 8, 256>}, {transform_indices = @transform_1, window_bounds = array<i64: 8, 512>}]} {
    %c0 = arith.constant 0 : index
    %c0_0 = arith.constant 0 : index
    %0 = vector.load %arg1[%c0, %c0_0] : memref<8x256xf32, #tpu.memory_space<vmem>>, vector<8x256xf32>
    %1 = tpu.iota {dimensions = array<i32: 1>} : vector<1x256xi32>
    %c15_i32 = arith.constant 15 : i32
    %2 = vector.broadcast %c15_i32 : i32 to vector<1x256xi32>
    %3 = arith.andi %1, %2 : vector<1x256xi32>
    %c16_i32 = arith.constant 16 : i32
    %4 = vector.broadcast %c16_i32 : i32 to vector<1x256xi32>
    %5 = arith.cmpi sge, %1, %4 : vector<1x256xi32>
    %c240_i32 = arith.constant 240 : i32
    %6 = vector.broadcast %c240_i32 : i32 to vector<1x256xi32>
    %7 = arith.cmpi slt, %1, %6 : vector<1x256xi32>
    %c0_i32 = arith.constant 0 : i32
    %8 = vector.broadcast %c0_i32 : i32 to vector<1x256xi32>
    %9 = arith.cmpi sgt, %3, %8 : vector<1x256xi32>
    %10 = vector.shape_cast %9 : vector<1x256xi1> to vector<1x256xi1>
    %11 = vector.broadcast %10 : vector<1x256xi1> to vector<8x256xi1>
    %c15_i32_1 = arith.constant 15 : i32
    %12 = vector.broadcast %c15_i32_1 : i32 to vector<1x256xi32>
    %13 = arith.cmpi slt, %3, %12 : vector<1x256xi32>
    %14 = vector.shape_cast %13 : vector<1x256xi1> to vector<1x256xi1>
    %15 = vector.broadcast %14 : vector<1x256xi1> to vector<8x256xi1>
    %c16_i32_2 = arith.constant 16 : i32
    %16 = tpu.dynamic_rotate %0 by %c16_i32_2 dim 1 : vector<8x256xf32>, i32 -> vector<8x256xf32>
    %c0_i32_3 = arith.constant 0 : i32
    %17 = arith.sitofp %c0_i32_3 : i32 to f32
    %18 = vector.shape_cast %5 : vector<1x256xi1> to vector<1x256xi1>
    %19 = vector.broadcast %18 : vector<1x256xi1> to vector<8x256xi1>
    %20 = vector.broadcast %17 : f32 to vector<8x256xf32>
    %21 = arith.select %19, %16, %20 : vector<8x256xi1>, vector<8x256xf32>
    %c240_i32_4 = arith.constant 240 : i32
    %22 = tpu.dynamic_rotate %0 by %c240_i32_4 dim 1 : vector<8x256xf32>, i32 -> vector<8x256xf32>
    %c0_i32_5 = arith.constant 0 : i32
    %23 = arith.sitofp %c0_i32_5 : i32 to f32
    %24 = vector.shape_cast %7 : vector<1x256xi1> to vector<1x256xi1>
    %25 = vector.broadcast %24 : vector<1x256xi1> to vector<8x256xi1>
    %26 = vector.broadcast %23 : f32 to vector<8x256xf32>
    %27 = arith.select %25, %22, %26 : vector<8x256xi1>, vector<8x256xf32>
    %cst = arith.constant 2.000000e+00 : f32
    %28 = vector.broadcast %cst : f32 to vector<8x256xf32>
    %29 = arith.mulf %28, %0 : vector<8x256xf32>
    %30 = arith.addf %21, %29 : vector<8x256xf32>
    %31 = arith.addf %30, %27 : vector<8x256xf32>
    %32 = arith.subf %27, %21 : vector<8x256xf32>
    %c255_i32 = arith.constant 255 : i32
    %33 = tpu.dynamic_rotate %31 by %c255_i32 dim 1 : vector<8x256xf32>, i32 -> vector<8x256xf32>
    %c0_i32_6 = arith.constant 0 : i32
    %34 = arith.sitofp %c0_i32_6 : i32 to f32
    %35 = vector.broadcast %34 : f32 to vector<8x256xf32>
    %36 = arith.select %15, %33, %35 : vector<8x256xi1>, vector<8x256xf32>
    %c1_i32 = arith.constant 1 : i32
    %37 = tpu.dynamic_rotate %31 by %c1_i32 dim 1 : vector<8x256xf32>, i32 -> vector<8x256xf32>
    %c0_i32_7 = arith.constant 0 : i32
    %38 = arith.sitofp %c0_i32_7 : i32 to f32
    %39 = vector.broadcast %38 : f32 to vector<8x256xf32>
    %40 = arith.select %11, %37, %39 : vector<8x256xi1>, vector<8x256xf32>
    %41 = arith.subf %36, %40 : vector<8x256xf32>
    %c0_8 = arith.constant 0 : index
    %c0_9 = arith.constant 0 : index
    %42 = vector.load %arg2[%c0_8, %c0_9] : memref<8x512xf32, #tpu.memory_space<vmem>>, vector<8x256xf32>
    tpu.vector_store %arg2[%c0_8, %c0_9], %41 {strides = array<i32>} : memref<8x512xf32, #tpu.memory_space<vmem>>, vector<8x256xf32>,
    %c1_i32_10 = arith.constant 1 : i32
    %43 = tpu.dynamic_rotate %32 by %c1_i32_10 dim 1 : vector<8x256xf32>, i32 -> vector<8x256xf32>
    %c0_i32_11 = arith.constant 0 : i32
    %44 = arith.sitofp %c0_i32_11 : i32 to f32
    %45 = vector.broadcast %44 : f32 to vector<8x256xf32>
    %46 = arith.select %11, %43, %45 : vector<8x256xi1>, vector<8x256xf32>
    %cst_12 = arith.constant 2.000000e+00 : f32
    %47 = vector.broadcast %cst_12 : f32 to vector<8x256xf32>
    %48 = arith.mulf %47, %32 : vector<8x256xf32>
    %49 = arith.addf %46, %48 : vector<8x256xf32>
    %c255_i32_13 = arith.constant 255 : i32
    %50 = tpu.dynamic_rotate %32 by %c255_i32_13 dim 1 : vector<8x256xf32>, i32 -> vector<8x256xf32>
    %c0_i32_14 = arith.constant 0 : i32
    %51 = arith.sitofp %c0_i32_14 : i32 to f32
    %52 = vector.broadcast %51 : f32 to vector<8x256xf32>
    %53 = arith.select %15, %50, %52 : vector<8x256xi1>, vector<8x256xf32>
    %54 = arith.addf %49, %53 : vector<8x256xf32>
    %c0_15 = arith.constant 0 : index
    %c256 = arith.constant 256 : index
    %55 = vector.load %arg2[%c0_15, %c256] : memref<8x512xf32, #tpu.memory_space<vmem>>, vector<8x256xf32>
    tpu.vector_store %arg2[%c0_15, %c256], %54 {strides = array<i32>} : memref<8x512xf32, #tpu.memory_space<vmem>>, vector<8x256xf32>,
    return
  }
  func.func @transform_0(%arg0: i32) -> (i32, i32) {
    %c0_i32 = arith.constant 0 : i32
    %c0_i32_0 = arith.constant 0 : i32
    return %arg0, %c0_i32 : i32, i32
  }
  func.func @transform_1(%arg0: i32) -> (i32, i32) {
    %c0_i32 = arith.constant 0 : i32
    %c0_i32_0 = arith.constant 0 : i32
    return %arg0, %c0_i32 : i32, i32
  }
}

</mosaic_0001>

<bundles_post_ra>
// kernel: tpu_custom_call.1
= control target key start
LH: loop header
LB: loop body
LE: loop exit
PB: predicated region body
PF: predicated region fallthrough
CT: control target
= control target key end

     0   :  { %6 = vsyncpa [#allocation3], 0  ;;  %s290_s0 = inlined_call_operand.hbm [shape: f32[8,256], index: 0, kind: input, shape index: {}]   ;;  %s291_s1 = inlined_call_operand.hbm [shape: f32[8,512], index: 1, kind: output, shape index: {}]  }
   0x1   :  { %7 = vsyncpa [#allocation4], 0  ;;  %s193_s6 = smov [#allocation2]   ;;  %s145_s10 = scalar_lea.hbm %s290_s0, 256 }
   0x2   :  { %s14_s7 = sshll.u32 %s193_s6, 4  ;;  %p146_p0 = scmp.ne.s32.totalorder %s290_s0, %s145_s10  ;;  %s15_s7 = int_to_ptr.vmem [resolvable:$true] %s14_s7 }
   0x3   :  { %p149_p1 = scmp.lt.u32.totalorder %s145_s10, %s290_s0 }
   0x5   :  { %p151_p2 = pnand %p149_p1, %p146_p0 }
   0x7   :  { %154 = shalt.err (!%p151_p2)
}
   0x8   :  { %s155_s15 = scalar_lea.vmem %s15_s7, 256  ;;  %p160_p4 = scmp.lt.s32.totalorder %s15_s7, %s15_s7 }
   0x9   :  { %p156_p3 = scmp.ne.s32.totalorder %s15_s7, %s155_s15  ;;  %p161_p5 = scmp.lt.s32.totalorder %s155_s15, %s155_s15 }
   0xb   :  { %p162_p6 = por %p161_p5, %p160_p4 }
   0xd   :  { %p163_p7 = pnand %p162_p6, %p156_p3 }
   0xf   :  { %166 = shalt.err (!%p163_p7)
}
  0x10   :  { %17 = dma.hbm_to_vmem [thread:$0]  %s290_s0, 256, %s15_s7, [#allocation3]  }
  0x11   :  { %189 = dma.done.wait [#allocation3], 256  }
  0x12   :  { %190 = vsyncadd [#allocation3], 4294967040  ;;  %v21_v0 = vld [vmem:[#allocation2] sm:$0xff]  ;;  %s194_s18 = smov 112   ;;  %s195_s19 = smov 16   ;;  %v22_v1 = vld [vmem:[#allocation2 + $0x8] sm:$0xff]  ;;  %v23_v2 = vlaneseq }
  0x13   :  { %57 = vrot.lane.b32.xlu1 %v21_v0, %s194_s18  ;;  %44 = vrot.lane.b32.xlu0 %v21_v0, %s195_s19  ;;  %v70_v7 = vmul.f32 2.0, %v21_v0  ;;  %v71_v8 = vmul.f32 2.0, %v22_v1  ;;  %s196_s0 = smov 1   ;;  %s197_s20 = smov 127  }
  0x14   :  { %v221_v3 = vand.u32 127, %v23_v2  ;;  %s198_s21 = smov [#allocation5]  }
  0x15   :  { %s130_s22 = sshll.u32 %s198_s21, 4  ;;  %s131_s22 = int_to_ptr.vmem [resolvable:$true] %s130_s22 }
  0x16   :  { %v25_v4 = vadd.s32 128, %v221_v3  ;;  %vm61_vm0 = vcmp.lt.s32.totalorder %v221_v3, 112  ;;  %vm48_vm1 = vcmp.lt.s32.totalorder %v221_v3, 16  ;;  %vm28_vm3 = vcmp.ge.s32.totalorder %v221_v3, 16  ;;  %s167_s23 = scalar_lea.vmem %s131_s22, 512  ;;  %p172_p9 = scmp.lt.s32.totalorder %s131_s22, %s131_s22 }
  0x17   :  { %59 = vrot.lane.b32.xlu1 %v22_v1, %s194_s18  ;;  %46 = vrot.lane.b32.xlu0 %v22_v1, %s195_s19  ;;  %v26_v25 = vand.u32 15, %v221_v3  ;;  %vm91_vm4 = vcmp.lt.s32.totalorder %v221_v3, 1  ;;  %vm82_vm5 = vcmp.lt.s32.totalorder %v221_v3, 127  ;;  %p168_p8 = scmp.ne.s32.totalorder %s131_s22, %s167_s23  ;;  %p173_p10 = scmp.lt.s32.totalorder %s167_s23, %s167_s23 }
  0x18   :  { %vm31_vm2 = vcmp.lt.s32.totalorder %v25_v4, 240  ;;  %v27_v26 = vand.u32 15, %v25_v4 }
  0x19   :  { %vm230_vm6 = vcmp.gt.s32.totalorder %v26_v25, 0  ;;  %vm242_vm8 = vcmp.lt.s32.totalorder %v26_v25, 15  ;;  %p174_p11 = por %p173_p10, %p172_p9 }
  0x1a   :  { %vm234_vm7 = vcmp.gt.s32.totalorder %v27_v26, 0  ;;  %vm246_vm9 = vcmp.lt.s32.totalorder %v27_v26, 15 }
  0x1b   :  { %p175_p12 = pnand %p174_p11, %p168_p8 }
  0x85   :  { %v58_v5 = vpop.permute.xlu1 %57  ;;  %v45_v6 = vpop.permute.xlu0 %44 }
  0x89   :  { %v60_v9 = vpop.permute.xlu1 %59  ;;  %v47_v10 = vpop.permute.xlu0 %46 }
  0x8a   :  { %v62_v11 = vsel %vm61_vm0, %v58_v5, %v60_v9  ;;  %v63_v12 = vsel %vm61_vm0, %v60_v9, %v58_v5  ;;  %v49_v13 = vsel %vm48_vm1, %v45_v6, %v47_v10  ;;  %v50_v14 = vsel %vm48_vm1, %v47_v10, %v45_v6 }
  0x8b   :  { %v69_v15 = vsel %vm31_vm2, %v63_v12, 0.0  ;;  %v55_v16 = vsel %vm28_vm3, %v50_v14, 0.0  ;;  %v73_v18 = vadd.f32 %v71_v8, %v49_v13 }
  0x8c   :  { %v72_v17 = vadd.f32 %v70_v7, %v55_v16  ;;  %v76_v19 = vsub.f32 %v62_v11, %v55_v16  ;;  %v77_v20 = vsub.f32 %v69_v15, %v49_v13 }
  0x8d   :  { %v75_v21 = vadd.f32 %v73_v18, %v69_v15 }
  0x8e   :  { %100 = vrot.lane.b32.xlu0 %v76_v19, %s196_s0  ;;  %102 = vrot.lane.b32.xlu1 %v77_v20, %s196_s0  ;;  %v74_v22 = vadd.f32 %v72_v17, %v62_v11  ;;  %v108_v47 = vmul.f32 2.0, %v76_v19  ;;  %v109_v48 = vmul.f32 2.0, %v77_v20 }
  0x92   :  { %80 = vrot.lane.b32.xlu1 %v75_v21, %s197_s20  ;;  %78 = vrot.lane.b32.xlu0 %v74_v22, %s197_s20 }
  0x96   :  { %89 = vrot.lane.b32.xlu1 %v75_v21, %s196_s0  ;;  %87 = vrot.lane.b32.xlu0 %v74_v22, %s196_s0 }
  0x9a   :  { %114 = vrot.lane.b32.xlu1 %v77_v20, %s197_s20  ;;  %112 = vrot.lane.b32.xlu0 %v76_v19, %s197_s20 }
 0x100   :  { %v101_v23 = vpop.permute.xlu0 %100  ;;  %v103_v24 = vpop.permute.xlu1 %102 }
 0x101   :  { %v104_v31 = vsel %vm91_vm4, %v101_v23, %v103_v24  ;;  %v105_v32 = vsel %vm91_vm4, %v103_v24, %v101_v23 }
 0x102   :  { %v106_v39 = vsel %vm230_vm6, %v105_v32, 0.0  ;;  %v107_v40 = vsel %vm234_vm7, %v104_v31, 0.0 }
 0x103   :  { %v110_v53 = vadd.f32 %v108_v47, %v106_v39  ;;  %v111_v54 = vadd.f32 %v109_v48, %v107_v40 }
 0x104   :  { %v81_v27 = vpop.permute.xlu1 %80  ;;  %v79_v28 = vpop.permute.xlu0 %78 }
 0x105   :  { %v83_v35 = vsel %vm82_vm5, %v79_v28, %v81_v27  ;;  %v84_v36 = vsel %vm82_vm5, %v81_v27, %v79_v28 }
 0x106   :  { %v85_v43 = vsel %vm242_vm8, %v83_v35, 0.0  ;;  %v86_v44 = vsel %vm246_vm9, %v84_v36, 0.0 }
 0x108   :  { %v90_v37 = vpop.permute.xlu1 %89  ;;  %v88_v38 = vpop.permute.xlu0 %87 }
 0x109   :  { %v92_v41 = vsel %vm91_vm4, %v88_v38, %v90_v37  ;;  %v93_v42 = vsel %vm91_vm4, %v90_v37, %v88_v38 }
 0x10a   :  { %v94_v45 = vsel %vm230_vm6, %v93_v42, 0.0  ;;  %v95_v46 = vsel %vm234_vm7, %v92_v41, 0.0 }
 0x10b   :  { %v96_v49 = vsub.f32 %v85_v43, %v94_v45  ;;  %v97_v50 = vsub.f32 %v86_v44, %v95_v46 }
 0x10c   :  { %v115_v51 = vpop.permute.xlu1 %114  ;;  %v113_v52 = vpop.permute.xlu0 %112 }
 0x10d   :  { %98 = vst [vmem:[#allocation5] sm:$0xff] %v96_v49  ;;  %99 = vst [vmem:[#allocation5 + $0x8] sm:$0xff] %v97_v50  ;;  %v116_v55 = vsel %vm82_vm5, %v113_v52, %v115_v51  ;;  %v117_v56 = vsel %vm82_vm5, %v115_v51, %v113_v52 }
 0x10e   :  { %v118_v57 = vsel %vm242_vm8, %v116_v55, 0.0  ;;  %v119_v58 = vsel %vm246_vm9, %v117_v56, 0.0 }
 0x10f   :  { %v120_v59 = vadd.f32 %v118_v57, %v110_v53  ;;  %v121_v60 = vadd.f32 %v119_v58, %v111_v54 }
 0x111   :  { %122 = vst [vmem:[#allocation5 + $0x10] sm:$0xff] %v120_v59  ;;  %123 = vst [vmem:[#allocation5 + $0x18] sm:$0xff] %v121_v60 }
 0x112   :  { %178 = shalt.err (!%p175_p12)
}
 0x113   :  { %s179_s26 = scalar_lea.hbm %s291_s1, 512 }
 0x114   :  { %p180_p13 = scmp.ne.s32.totalorder %s291_s1, %s179_s26  ;;  %p183_p0 = scmp.lt.u32.totalorder %s179_s26, %s291_s1 }
 0x116   :  { %p185_p1 = pnand %p183_p0, %p180_p13 }
 0x118   :  { %188 = shalt.err (!%p185_p1)
}
 0x119   :  { %133 = dma.vmem_to_hbm [thread:$0]  %s131_s22, 512, %s291_s1, [#allocation4]  }
 0x11a   :  { %191 = dma.done.wait [#allocation4], 512  }
 0x11b   :  { %192 = vsyncadd [#allocation4], 4294966784 }
 0x11c   :  { %137 = vsyncpa [#allocation3], 1 }
 0x11d   :  { %138 = vsyncpa [#allocation4], 1 }

</bundles_post_ra>
